<compile_context>
chip_gen: v7x
topology: tpu7x:2x2x1
jax: 0.10.0
libtpu: 0.0.40
codegen_flags: <defaults>
</compile_context>

<pallas_src>
import functools

import jax
import jax.numpy as jnp
import numpy as np
from jax.experimental import pallas as pl
from jax.experimental.pallas import tpu as pltpu


def _pooling_matrix(S, P):
    """Constant (Po*Po, S*S) AvgPool2d(kernel=P, stride=P) matrix.

    Row q holds 1/(P*P) at every row-major spatial index covered by pooling
    window q; columns beyond Po*P rows/cols are simply zero (tail truncation).
    """
    Po = S // P
    pm = np.zeros((Po * Po, S * S), dtype=np.float32)
    inv = 1.0 / float(P * P)
    for pi in range(Po):
        for pj in range(Po):
            q = pi * Po + pj
            for di in range(P):
                row = pi * P + di
                col0 = row * S + pj * P
                pm[q, col0:col0 + P] = inv
    return jnp.asarray(pm)


def _pick_block_b(B, block_b):
    """Batch tile: divides B, <= block_b, and leaves >= 2 grid steps if B >= 2."""
    cap = max(1, min(block_b, B // 2)) if B >= 2 else 1
    tb = cap
    while tb > 1 and B % tb:
        tb -= 1
    return tb


def _omp_kernel(x_ref, w_ref, pm_ref, o_ref, *, alpha, M):
    TB = x_ref.shape[0]
    x = x_ref[...]                                                   # (TB, N, K)
    w = jnp.broadcast_to(w_ref[...][None], (TB,) + w_ref.shape)      # (TB, K, M)

    # --- matmul on the MXU, f32 accumulation --------------------------------
    y = jnp.einsum("bnk,bkm->bnm", x, w,
                   preferred_element_type=jnp.float32)               # (TB, N, M)

    # --- fused Softshrink(alpha) + pos/neg split (2 add + 2 min/max) --------
    pos = jnp.maximum(y - alpha, 0.0)
    neg = jnp.minimum(y + alpha, 0.0)

    # --- AvgPool2d as MXU matmul against the resident pooling matrix --------
    pm = jnp.broadcast_to(pm_ref[...][None], (TB,) + pm_ref.shape)   # (TB, Q, N)
    pooled_pos = jnp.einsum("bqn,bnm->bqm", pm, pos,
                            preferred_element_type=jnp.float32)      # (TB, Q, M)
    pooled_neg = jnp.einsum("bqn,bnm->bqm", pm, neg,
                            preferred_element_type=jnp.float32)      # (TB, Q, M)

    # tiny pooled concat + one dense full-tile store (channels: [pos | neg])
    o_ref[...] = jnp.concatenate([pooled_pos, pooled_neg], axis=-1)  # (TB, Q, 2M)


def omp_t_forward(x, w, *, alpha, S, P, block_b=8, compute_dtype=jnp.bfloat16):
    """Pallas implementation of OmpT.forward for x of shape (B, S*S, K)."""
    B, N, K = x.shape
    K2, M = w.shape
    assert K == K2 and N == S * S
    Po = S // P                       # == (S - P) // P + 1 (AvgPool2d truncation)
    Q = Po * Po

    # bf16 feeds the MXU natively on v5e/v6e/v7x (v7x MXU has no int path);
    # accumulation and all post-matmul math stay f32.
    x_c = x.astype(compute_dtype)
    w_c = w.astype(compute_dtype)
    pm = _pooling_matrix(S, P)        # (Q, N) f32, VMEM-resident across the grid

    TB = _pick_block_b(B, block_b)
    grid = (B // TB,)

    itemsize = jnp.dtype(compute_dtype).itemsize
    # rough per-step VMEM budget (double-buffered inputs/outputs + intermediates)
    vmem_est = (2 * TB * N * K * itemsize      # x tile
                + 2 * K * M * itemsize         # w
                + 2 * Q * N * 4                # pooling matrix
                + 2 * TB * Q * 2 * M * 4       # output tile
                + 4 * TB * N * M * 4)          # y / pos / neg live values
    # keep the explicit limit under ~48 MiB so the same tiling ports to v7x
    # (64 MiB physical VMEM).  TODO(synk): for very large S/K add a K-reduction
    # grid axis ("arbitrary") with an f32 accumulator instead of one big tile.
    vmem_limit = int(min(max(32 * 1024 * 1024, 2 * vmem_est), 48 * 1024 * 1024))

    flops = 2 * B * N * K * M + 2 * (2 * B * Q * N * M)
    bytes_accessed = (B * N * K * itemsize + K * M * itemsize
                      + Q * N * 4 + B * Q * 2 * M * 4)

    kernel = functools.partial(_omp_kernel, alpha=float(alpha), M=M)
    pooled = pl.pallas_call(
        kernel,
        out_shape=jax.ShapeDtypeStruct((B, Q, 2 * M), jnp.float32),
        grid_spec=pltpu.PrefetchScalarGridSpec(
            num_scalar_prefetch=0,
            grid=grid,
            in_specs=[
                pl.BlockSpec((TB, N, K), lambda g: (g, 0, 0)),   # X batch tile
                pl.BlockSpec((K, M), lambda g: (0, 0)),          # W (shared)
                pl.BlockSpec((Q, N), lambda g: (0, 0)),          # pooling matrix
            ],
            out_specs=pl.BlockSpec((TB, Q, 2 * M), lambda g: (g, 0, 0)),
        ),
        compiler_params=pltpu.CompilerParams(
            dimension_semantics=("parallel",),
            vmem_limit_bytes=vmem_limit,
        ),
        cost_estimate=pl.CostEstimate(
            flops=flops, transcendentals=0, bytes_accessed=bytes_accessed),
    )(x_c, w_c, pm)

    # glue: (B, Q, 2M) -> (B, 2M, Q) -> (B, 2M*Q)  (torch channel-major flatten)
    return jnp.swapaxes(pooled, 1, 2).reshape(B, 2 * M * Q)


def omp_t_reference(x, w, *, alpha, S, P, compute_dtype=None):
    """Pure-JAX transcription of the PyTorch forward, for verification."""
    B = x.shape[0]
    M = w.shape[1]
    Po = S // P
    if compute_dtype is not None:
        x = x.astype(compute_dtype)
        w = w.astype(compute_dtype)
    y = jnp.matmul(x, w, preferred_element_type=jnp.float32)        # (B, N, M)
    y = jnp.where(y > alpha, y - alpha, jnp.where(y < -alpha, y + alpha, 0.0))
    pos = y * (y >= 0)
    neg = y * (y < 0)
    emb = jnp.concatenate([pos, neg], axis=2)                       # (B, N, 2M)
    emb = jnp.swapaxes(emb, 1, 2).reshape(B, 2 * M, S, S)
    emb = emb[:, :, : Po * P, : Po * P]
    emb = emb.reshape(B, 2 * M, Po, P, Po, P).mean(axis=(3, 5))
    return emb.reshape(B, -1)


if __name__ == "__main__":
    # Small shapes consistent with the module (out_channels=M, out_img_size=S,
    # pool_param=P); S % P != 0 exercises AvgPool2d's tail truncation (like 27/8).
    B, K, M, S, P = 2, 16, 8, 11, 4
    alpha = 0.25
    N = S * S

    key = jax.random.PRNGKey(0)
    kx, kw = jax.random.split(key)
    x = jax.random.normal(kx, (B, N, K), dtype=jnp.float32)
    # deterministic synthetic "pretrained" weights, scaled so Softshrink's
    # dead zone actually zeroes a fraction of activations
    w = jax.random.normal(kw, (K, M), dtype=jnp.float32) * 0.1

    out = jax.block_until_ready(omp_t_forward(x, w, alpha=alpha, S=S, P=P))

    Po = S // P
    assert out.shape == (B, 2 * M * Po * Po)

    # tight check vs. a reference that mirrors the kernel's bf16 input cast
    ref_bf16 = omp_t_reference(x, w, alpha=alpha, S=S, P=P,
                               compute_dtype=jnp.bfloat16)
    np.testing.assert_allclose(np.asarray(out), np.asarray(ref_bf16),
                               rtol=1e-4, atol=1e-4)

    # loose sanity check vs. full-f32 torch semantics (bf16 input rounding)
    ref_f32 = omp_t_reference(x, w, alpha=alpha, S=S, P=P)
    np.testing.assert_allclose(np.asarray(out), np.asarray(ref_f32),
                               rtol=5e-2, atol=3e-2)

    print("KERNEL_OK")
</pallas_src>

<mosaic_0001>
module attributes {stable_mosaic.version = 11 : i64} {
  func.func @_omp_kernel(%arg0: i32, %arg1: memref<1x121x16xbf16, #tpu.memory_space<vmem>>, %arg2: memref<16x8xbf16, #tpu.memory_space<vmem>>, %arg3: memref<4x121xf32, #tpu.memory_space<vmem>>, %arg4: memref<1x4x16xf32, #tpu.memory_space<vmem>>) attributes {dimension_semantics = [#tpu.dimension_semantics<parallel>], iteration_bounds = array<i64: 2>, scalar_prefetch = 0 : i64, scratch_operands = 0 : i64, tpu.core_type = #tpu.core_type<tc>, window_params = [{transform_indices = @transform_0, window_bounds = array<i64: 1, 121, 16>}, {pipeline_mode = #tpu.pipeline_mode<synchronous>, transform_indices = @transform_1, window_bounds = array<i64: 16, 8>}, {pipeline_mode = #tpu.pipeline_mode<synchronous>, transform_indices = @transform_2, window_bounds = array<i64: 4, 121>}, {transform_indices = @transform_3, window_bounds = array<i64: 1, 4, 16>}]} {
    %c0 = arith.constant 0 : index
    %c0_0 = arith.constant 0 : index
    %c0_1 = arith.constant 0 : index
    %0 = vector.load %arg1[%c0, %c0_0, %c0_1] : memref<1x121x16xbf16, #tpu.memory_space<vmem>>, vector<1x121x16xbf16>
    %c0_2 = arith.constant 0 : index
    %c0_3 = arith.constant 0 : index
    %1 = vector.load %arg2[%c0_2, %c0_3] : memref<16x8xbf16, #tpu.memory_space<vmem>>, vector<16x8xbf16>
    %2 = vector.shape_cast %1 : vector<16x8xbf16> to vector<1x16x8xbf16>
    "tpu.trace_start"() <{level = 10 : i32, message = "bnk,bkm->bnm"}> : () -> ()
    %cst = arith.constant dense<0.000000e+00> : vector<1x121x8xf32>
    %3 = tpu.matmul %0, %2, %cst {dimension_numbers = #tpu.dot_dimension_numbers<[2], [1], [1], [2], [0, 0, 0, 1, 1, 2], [0], [0]>} : vector<1x121x16xbf16>, vector<1x16x8xbf16>, vector<1x121x8xf32> -> vector<1x121x8xf32>
    "tpu.trace_stop"() : () -> ()
    %cst_4 = arith.constant 2.500000e-01 : f32
    %4 = vector.broadcast %cst_4 : f32 to vector<1x121x8xf32>
    %5 = arith.subf %3, %4 : vector<1x121x8xf32>
    %cst_5 = arith.constant 0.000000e+00 : f32
    %6 = vector.broadcast %cst_5 : f32 to vector<1x121x8xf32>
    %7 = arith.maximumf %5, %6 : vector<1x121x8xf32>
    %cst_6 = arith.constant 2.500000e-01 : f32
    %8 = vector.broadcast %cst_6 : f32 to vector<1x121x8xf32>
    %9 = arith.addf %3, %8 : vector<1x121x8xf32>
    %cst_7 = arith.constant 0.000000e+00 : f32
    %10 = vector.broadcast %cst_7 : f32 to vector<1x121x8xf32>
    %11 = arith.minimumf %9, %10 : vector<1x121x8xf32>
    %c0_8 = arith.constant 0 : index
    %c0_9 = arith.constant 0 : index
    %12 = vector.load %arg3[%c0_8, %c0_9] : memref<4x121xf32, #tpu.memory_space<vmem>>, vector<4x121xf32>
    %13 = vector.shape_cast %12 : vector<4x121xf32> to vector<1x4x121xf32>
    "tpu.trace_start"() <{level = 10 : i32, message = "bqn,bnm->bqm"}> : () -> ()
    %cst_10 = arith.constant dense<0.000000e+00> : vector<1x4x8xf32>
    %14 = tpu.matmul %13, %7, %cst_10 {dimension_numbers = #tpu.dot_dimension_numbers<[2], [1], [1], [2], [0, 0, 0, 1, 1, 2], [0], [0]>} : vector<1x4x121xf32>, vector<1x121x8xf32>, vector<1x4x8xf32> -> vector<1x4x8xf32>
    %cst_11 = arith.constant dense<0.000000e+00> : vector<1x4x8xf32>
    %15 = tpu.matmul %13, %11, %cst_11 {dimension_numbers = #tpu.dot_dimension_numbers<[2], [1], [1], [2], [0, 0, 0, 1, 1, 2], [0], [0]>} : vector<1x4x121xf32>, vector<1x121x8xf32>, vector<1x4x8xf32> -> vector<1x4x8xf32>
    "tpu.trace_stop"() : () -> ()
    %16 = tpu.concatenate %14, %15 in 2 : vector<1x4x8xf32>, vector<1x4x8xf32> -> vector<1x4x16xf32>
    %c0_12 = arith.constant 0 : index
    %c0_13 = arith.constant 0 : index
    %c0_14 = arith.constant 0 : index
    %17 = vector.load %arg4[%c0_12, %c0_13, %c0_14] : memref<1x4x16xf32, #tpu.memory_space<vmem>>, vector<1x4x16xf32>
    tpu.vector_store %arg4[%c0_12, %c0_13, %c0_14], %16 {strides = array<i32>} : memref<1x4x16xf32, #tpu.memory_space<vmem>>, vector<1x4x16xf32>,
    return
  }
  func.func @transform_0(%arg0: i32) -> (i32, i32, i32) {
    %c0_i32 = arith.constant 0 : i32
    %c0_i32_0 = arith.constant 0 : i32
    %c0_i32_1 = arith.constant 0 : i32
    return %arg0, %c0_i32, %c0_i32_0 : i32, i32, i32
  }
  func.func @transform_1(%arg0: i32) -> (i32, i32) {
    %c0_i32 = arith.constant 0 : i32
    %c0_i32_0 = arith.constant 0 : i32
    %c0_i32_1 = arith.constant 0 : i32
    return %c0_i32, %c0_i32_0 : i32, i32
  }
  func.func @transform_2(%arg0: i32) -> (i32, i32) {
    %c0_i32 = arith.constant 0 : i32
    %c0_i32_0 = arith.constant 0 : i32
    %c0_i32_1 = arith.constant 0 : i32
    return %c0_i32, %c0_i32_0 : i32, i32
  }
  func.func @transform_3(%arg0: i32) -> (i32, i32, i32) {
    %c0_i32 = arith.constant 0 : i32
    %c0_i32_0 = arith.constant 0 : i32
    %c0_i32_1 = arith.constant 0 : i32
    return %arg0, %c0_i32, %c0_i32_0 : i32, i32, i32
  }
}

</mosaic_0001>

<bundles_post_ra>
// kernel: tpu_custom_call.1
= control target key start
LH: loop header
LB: loop body
LE: loop exit
PB: predicated region body
PF: predicated region fallthrough
CT: control target
= control target key end

     0   :  { %8 = vsyncpa [#allocation3], 0  ;;  %s1156_s0 = inlined_call_operand.vmem [shape: bf16[2,121,16], index: 0, kind: input, shape index: {}]   ;;  %s1157_s1 = inlined_call_operand.vmem [shape: bf16[16,8], index: 1, kind: input, shape index: {}]   ;;  %s1158_s2 = inlined_call_operand.vmem [shape: f32[4,121], index: 2, kind: input, shape index: {}]   ;;  %s1159_s3 = inlined_call_operand.hbm [shape: f32[2,4,16], index: 3, kind: output, shape index: {}]  }
   0x1   :  { %10 = vsyncpa [#allocation3 + $0x1], 0  ;;  %s1026_s12 = smov 0   ;;  %s1028_s13 = smov 0  }
   0x2   :  { %s1030_s14 = smov 0   ;;  %s1032_s15 = smov 0  }
   0x3 LB: > { %s1047_s16 = sadd.s32 4294967295, %s998_s15   ;;  %s653_s17 = sadd.s32 4294967294, %s998_s15   ;;  %s998_s15 = sphi %s1032_s15, %s1165_s15   ;;  %s994_s14 = sphi %s1030_s14, %s1164_s14   ;;  %s990_s13 = sphi %s1028_s13, %s1163_s13   ;;  %s986_s12 = sphi %s1026_s12, %s1162_s12  }
   0x4   : > { %s1051_s18 = sadd.s32 1, %s998_s15   ;;  %s91_s19 = sadd.s32 1, %s994_s14 }
   0x5   : > { %s88_s20 = ssub.s32 %s998_s15, %s1051_s18  ;;  %p101_p0 = scmp.ne.s32.totalorder %s994_s14, %s990_s13 }
   0x6   : > { %p89_p1 = scmp.eq.s32.totalorder %s88_s20, 0  ;;  %p102_p2 = scmp.eq.s32.totalorder %s1047_s16, 1 }
   0x7   : > { %p107_p3 = scmp.ne.s32.totalorder %s990_s13, %s986_s12  ;;  %p108_p4 = scmp.eq.s32.totalorder %s653_s17, 1 }
   0x8   : > { %s1062_s21 = scalar_select %p89_p1, %s994_s14, %s91_s19  }
   0x9   : > { %p1064_p5 = por %p102_p2, %p101_p0  ;;  %p1068_p6 = por %p108_p4, %p107_p3 }
   0xa   : > { %p656_p7 = scmp.ge.s32.totalorder %s998_s15, 1  ;;  %p140_p8 = scmp.lt.s32.totalorder %s998_s15, 3 }
   0xc   : > { %p141_p9 = pnand %p656_p7, %p140_p8 }
   0xd   : > { %v927_v0 = vld [vmem:[%s1157_s1] sm:$0xff] (!%p141_p9)   ;;  %p164_p10 = scmp.lt.s32.totalorder (!%p141_p9), %s1047_s16, 1  ;;  %vm234_vm0 = vcmask (!%p141_p9), 130048   ;;  %v1000_v9 = vmov (!%p141_p9), 0.0|0.0   ;;  %vm1001_vm1 = vmmov (!%p141_p9), 0   ;;  %v1002_v10 = vmov (!%p141_p9), 0.0  }
   0xe   : > { %144 = sbr.rel (%p141_p9) target bundleno = 621 (0x26d), region = 32  ;;  %745 = vmatprep.subr.bf16.mxu0 (!%p141_p9), %v927_v0  ;;  %833 = vmatprep.subr.bf16.mxu1 (!%p141_p9), %v1000_v9  ;;  %vm425_vm2 = vcmask (!%p141_p9), 1040384   ;;  %vm1003_vm3 = vmmov (!%p141_p9), 1   ;;  %vm421_vm5 = vcmask (!%p141_p9), 990208   ;;  %s1004_s6 = smov (!%p141_p9), 8   ;;  %vm576_vm6 = vcmask (!%p141_p9), 64512  }
   0xf   : > { %746 = vmatpush3.bf16.msra.mxu0 (!%p141_p9), %v927_v0  ;;  %795 = vmatprep.mubr.msk.f32.mxu1 (!%p141_p9), %vm1001_vm1, %v1002_v10  ;;  %vm856_vm4 = vmpackc.low (!%p141_p9), %vm425_vm2, %vm1003_vm3  ;;  %s161_s7 = sand.u32 (!%p141_p9), 1, %s990_s13   ;;  %s698_s9 = sshll.u32 (!%p141_p9), %s1047_s16, 6  ;;  %vm578_vm7 = vcmask (!%p141_p9), 125952  }
  0x10   : > { %858 = vmatprep.subr.bf16.mxu0 (!%p141_p9), %v1000_v9  ;;  %s657_s8 = sshll.u32 (!%p141_p9), %s161_s7, 2  ;;  %s1114_s20 = scalar_lea.hbm (!%p141_p9), %s1159_s3, %s698_s9 }
  0x11   : > { %s163_s10 = scalar_lea.vmem (!%p141_p9), [#allocation2], %s657_s8  ;;  %s581_s24 = scalar_lea.sflag (!%p141_p9), [#allocation3], %s161_s7 }
  0x12   : > { %s594_s11 = sshll.u32 (!%p141_p9), %s163_s10, 4  ;;  %s1116_s11 = int_to_ptr.vmem [resolvable:$true] %s594_s11 }
  0x13   : > { %s936_s25 = scalar_lea.vmem (!%p141_p9), %s1116_s11, 64 }
  0x14   : > { %p937_p11 = scmp.ne.s32.totalorder (!%p141_p9), %s1116_s11, %s936_s25 }
  0x15   : > { %s165_s26 = scalar_select %p164_p10, %s1047_s16, 1 }
  0x16   : > { %p938_p12 = pnand %p937_p11, %p1064_p5  ;;  %s1005_s16 = smov [#allocation2]  }
  0x17   : > { %s701_s27 = sshll.u32 %s165_s26, 6  ;;  %s940_s26 = sshll.u32 %s1005_s16, 4  ;;  %s941_s26 = int_to_ptr.vmem [resolvable:$false] %s940_s26 }
  0x18   : > { %s168_s30 = scalar_lea.vmem %s1156_s0, %s701_s27  ;;  %p939_p13 = pneg %p938_p12 }
  0x19   : > { %v928_v1 = vld [vmem:[%s168_s30] sm:$0xff]   ;;  %v929_v2 = vld [vmem:[%s168_s30 + $0x8] sm:$0xff]   ;;  %v930_v3 = vld [vmem:[%s168_s30 + $0x10] sm:$0xff]   ;;  %s942_s27 = scalar_lea.vmem %s941_s26, 128  ;;  %p943_p0 = scmp.lt.s32.totalorder %s1116_s11, %s941_s26 }
  0x1a   : > { %747 = vmatprep.mubr.msk.bf16.mxu0 %vm234_vm0, %v928_v1  ;;  %v931_v4 = vld [vmem:[%s168_s30 + $0x18] sm:$0xff]   ;;  %v932_v5 = vld [vmem:[%s168_s30 + $0x20] sm:$0xff]   ;;  %v933_v6 = vld [vmem:[%s168_s30 + $0x28] sm:$0xff]   ;;  %p944_p1 = scmp.lt.s32.totalorder %s942_s27, %s936_s25 }
  0x1b   : > { %748 = vmatmul.mubr.msk.bf16.vlgmr.msra.gmra.mrb[0].mxu0 %vm234_vm0, %v929_v2  ;;  %v934_v7 = vld [vmem:[%s168_s30 + $0x30] sm:$0xff]   ;;  %v935_v8 = vld [vmem:[%s168_s30 + $0x38] sm:$0x1f]  }
  0x1c   : > { %751 = vmatprep.mubr.msk.bf16.mxu0 %vm234_vm0, %v930_v3  ;;  %p945_p2 = por %p944_p1, %p943_p0 }
  0x1e   : > { %p946_p3 = pnand %p945_p2, %p939_p13 }
  0x23   : > { %752 = vmatmul.mubr.msk.bf16.gmra.mrb[4].mxu0 %vm234_vm0, %v931_v4 }
  0x24   : > { %755 = vmatprep.mubr.msk.bf16.mxu0 %vm234_vm0, %v932_v5 }
  0x2b   : > { %756 = vmatmul.mubr.msk.bf16.gmra.mrb[8].mxu0 %vm234_vm0, %v933_v6 }
  0x2c   : > { %759 = vmatprep.mubr.msk.bf16.mxu0 %vm234_vm0, %v934_v7 }
  0x33   : > { %760 = vmatmul.mubr.msk.bf16.gmra.mrb[12].mxu0 %vm234_vm0, %v935_v8 }
  0x34   : > { %830 = vmatprep.mubr.msk.f32.mxu0 %vm1001_vm1, %v1002_v10 }
  0xee   : > { %v749_v11 = vpop.f32.mrb[0].mxu0 }
  0xef   : > { %v679_v12 = vadd.f32 -0.25, %v749_v11  ;;  %v390_v13 = vadd.f32 0.25, %v749_v11  ;;  %v293_v14 = vpop.f32.mrb[1].mxu0 }
  0xf0   : > { %v677_v15 = vadd.f32 -0.25, %v293_v14  ;;  %v388_v16 = vadd.f32 0.25, %v293_v14  ;;  %v750_v17 = vpop.f32.mrb[2].mxu0 }
  0xf1   : > { %v680_v18 = vadd.f32 -0.25, %v750_v17  ;;  %v391_v19 = vadd.f32 0.25, %v750_v17  ;;  %v296_v20 = vpop.f32.mrb[3].mxu0  ;;  %v374_v23 = vmax.f32 %v679_v12, 0.0  ;;  %v406_v24 = vmin.f32 %v390_v13, 0.0 }
  0xf2   : > { %v678_v21 = vadd.f32 -0.25, %v296_v20  ;;  %v389_v22 = vadd.f32 0.25, %v296_v20  ;;  %v372_v27 = vmax.f32 %v677_v15, 0.0  ;;  %v404_v28 = vmin.f32 %v388_v16, 0.0 }
  0xf3   : > { %v375_v25 = vmax.f32 %v680_v18, 0.0  ;;  %v407_v26 = vmin.f32 %v391_v19, 0.0 }
  0xf4   : > { %v373_v29 = vmax.f32 %v678_v21, 0.0  ;;  %v405_v30 = vmin.f32 %v389_v22, 0.0 }
  0xf5   : > { %v862_v31 = vpack.c.bf16 %v407_v26, %v406_v24  ;;  %v837_v32 = vpack.c.bf16 %v375_v25, %v374_v23 }
  0xf6   : > { %v859_v33 = vpack.c.bf16 %v405_v30, %v404_v28  ;;  %v753_v34 = vpop.f32.mrb[4].mxu0  ;;  %v834_v35 = vpack.c.bf16 %v373_v29, %v372_v27 }
  0xf7   : > { %v683_v36 = vadd.f32 -0.25, %v753_v34  ;;  %v394_v37 = vadd.f32 0.25, %v753_v34  ;;  %v309_v38 = vpop.f32.mrb[5].mxu0 }
  0xf8   : > { %v681_v39 = vadd.f32 -0.25, %v309_v38  ;;  %v392_v40 = vadd.f32 0.25, %v309_v38  ;;  %v754_v41 = vpop.f32.mrb[6].mxu0  ;;  %835 = vmatpush3.bf16.msra.mxu1 %v834_v35  ;;  %860 = vmatpush3.bf16.msra.mxu0 %v859_v33 }
  0xf9   : > { %v684_v42 = vadd.f32 -0.25, %v754_v41  ;;  %v395_v43 = vadd.f32 0.25, %v754_v41  ;;  %v312_v44 = vpop.f32.mrb[7].mxu0  ;;  %836 = vmatprep.subr.bf16.mxu1 %v1000_v9  ;;  %861 = vmatprep.subr.bf16.mxu0 %v1000_v9  ;;  %v378_v47 = vmax.f32 %v683_v36, 0.0  ;;  %v410_v48 = vmin.f32 %v394_v37, 0.0 }
  0xfa   : > { %v682_v45 = vadd.f32 -0.25, %v312_v44  ;;  %v393_v46 = vadd.f32 0.25, %v312_v44  ;;  %v376_v51 = vmax.f32 %v681_v39, 0.0  ;;  %v408_v52 = vmin.f32 %v392_v40, 0.0  ;;  %v420_v44 = vld [vmem:[%s1158_s2] sm:$0xf] }
  0xfb   : > { %v379_v49 = vmax.f32 %v684_v42, 0.0  ;;  %v411_v50 = vmin.f32 %v395_v43, 0.0 }
  0xfc   : > { %v377_v53 = vmax.f32 %v682_v45, 0.0  ;;  %v409_v54 = vmin.f32 %v393_v46, 0.0  ;;  %838 = vmatpush3.bf16.msra.mxu1 %v837_v32  ;;  %863 = vmatpush3.bf16.msra.mxu0 %v862_v31 }
  0xfd   : > { %v868_v55 = vpack.c.bf16 %v411_v50, %v410_v48  ;;  %839 = vmatprep.subr.bf16.mxu1 %v1000_v9  ;;  %864 = vmatprep.subr.bf16.mxu0 %v1000_v9  ;;  %v843_v56 = vpack.c.bf16 %v379_v49, %v378_v47 }
  0xfe   : > { %v865_v57 = vpack.c.bf16 %v409_v54, %v408_v52  ;;  %v757_v58 = vpop.f32.mrb[8].mxu0  ;;  %v840_v59 = vpack.c.bf16 %v377_v53, %v376_v51 }
  0xff   : > { %v687_v60 = vadd.f32 -0.25, %v757_v58  ;;  %v398_v61 = vadd.f32 0.25, %v757_v58  ;;  %v325_v62 = vpop.f32.mrb[9].mxu0 }
 0x100   : > { %v685_v63 = vadd.f32 -0.25, %v325_v62  ;;  %v396_v0 = vadd.f32 0.25, %v325_v62  ;;  %v758_v1 = vpop.f32.mrb[10].mxu0  ;;  %841 = vmatpush3.bf16.msra.mxu1 %v840_v59  ;;  %866 = vmatpush3.bf16.msra.mxu0 %v865_v57 }
 0x101   : > { %v688_v2 = vadd.f32 -0.25, %v758_v1  ;;  %v399_v3 = vadd.f32 0.25, %v758_v1  ;;  %v328_v4 = vpop.f32.mrb[11].mxu0  ;;  %842 = vmatprep.subr.bf16.mxu1 %v1000_v9  ;;  %867 = vmatprep.subr.bf16.mxu0 %v1000_v9  ;;  %v382_v7 = vmax.f32 %v687_v60, 0.0  ;;  %v414_v8 = vmin.f32 %v398_v61, 0.0 }
 0x102   : > { %v686_v5 = vadd.f32 -0.25, %v328_v4  ;;  %v397_v6 = vadd.f32 0.25, %v328_v4  ;;  %v380_v12 = vmax.f32 %v685_v63, 0.0  ;;  %v412_v13 = vmin.f32 %v396_v0, 0.0 }
 0x103   : > { %v383_v10 = vmax.f32 %v688_v2, 0.0  ;;  %v415_v11 = vmin.f32 %v399_v3, 0.0 }
 0x104   : > { %v381_v14 = vmax.f32 %v686_v5, 0.0  ;;  %v413_v15 = vmin.f32 %v397_v6, 0.0  ;;  %844 = vmatpush3.bf16.msra.mxu1 %v843_v56  ;;  %869 = vmatpush3.bf16.msra.mxu0 %v868_v55 }
 0x105   : > { %v874_v16 = vpack.c.bf16 %v415_v11, %v414_v8  ;;  %845 = vmatprep.subr.bf16.mxu1 %v1000_v9  ;;  %870 = vmatprep.subr.bf16.mxu0 %v1000_v9  ;;  %v849_v17 = vpack.c.bf16 %v383_v10, %v382_v7 }
 0x106   : > { %v871_v18 = vpack.c.bf16 %v413_v15, %v412_v13  ;;  %v761_v19 = vpop.f32.mrb[12].mxu0  ;;  %v846_v20 = vpack.c.bf16 %v381_v14, %v380_v12 }
 0x107   : > { %v691_v21 = vadd.f32 -0.25, %v761_v19  ;;  %v402_v22 = vadd.f32 0.25, %v761_v19  ;;  %v341_v23 = vpop.f32.mrb[13].mxu0 }
 0x108   : > { %v689_v24 = vadd.f32 -0.25, %v341_v23  ;;  %v400_v25 = vadd.f32 0.25, %v341_v23  ;;  %v762_v26 = vpop.f32.mrb[14].mxu0  ;;  %847 = vmatpush3.bf16.msra.mxu1 %v846_v20  ;;  %872 = vmatpush3.bf16.msra.mxu0 %v871_v18 }
 0x109   : > { %v692_v27 = vadd.f32 -0.25, %v762_v26  ;;  %v403_v28 = vadd.f32 0.25, %v762_v26  ;;  %v344_v29 = vpop.f32.mrb[15].mxu0  ;;  %848 = vmatprep.subr.bf16.mxu1 %v1000_v9  ;;  %873 = vmatprep.subr.bf16.mxu0 %v1000_v9  ;;  %v386_v32 = vmax.f32 %v691_v21, 0.0  ;;  %v418_v33 = vmin.f32 %v402_v22, 0.0 }
 0x10a   : > { %v690_v30 = vadd.f32 -0.25, %v344_v29  ;;  %v401_v31 = vadd.f32 0.25, %v344_v29  ;;  %v384_v36 = vmax.f32 %v689_v24, 0.0  ;;  %v416_v37 = vmin.f32 %v400_v25, 0.0 }
 0x10b   : > { %v387_v34 = vmax.f32 %v692_v27, 0.0  ;;  %v419_v35 = vmin.f32 %v403_v28, 0.0 }
 0x10c   : > { %v385_v38 = vmax.f32 %v690_v30, 0.0  ;;  %v417_v39 = vmin.f32 %v401_v31, 0.0  ;;  %850 = vmatpush3.bf16.msra.mxu1 %v849_v17  ;;  %875 = vmatpush3.bf16.msra.mxu0 %v874_v16 }
 0x10d   : > { %v855_v40 = vpack.c.bf16 %v387_v34, %v386_v32  ;;  %v880_v41 = vpack.c.bf16 %v419_v35, %v418_v33  ;;  %851 = vmatprep.subr.bf16.mxu1 %v1000_v9  ;;  %876 = vmatprep.subr.bf16.mxu0 %v1000_v9 }
 0x10e   : > { %v877_v42 = vpack.c.bf16 %v417_v39, %v416_v37  ;;  %v852_v43 = vpack.c.bf16 %v385_v38, %v384_v36 }
 0x110   : > { %853 = vmatpush3.bf16.msra.mxu1 %v852_v43  ;;  %878 = vmatpush3.bf16.msra.mxu0 %v877_v42 }
 0x111   : > { %854 = vmatprep.subr.bf16.mxu1 %v1000_v9  ;;  %879 = vmatprep.subr.bf16.mxu0 %v1000_v9 }
 0x114   : > { %857 = vmatpush3.bf16.msk.msra.mxu1 %vm856_vm4, %v855_v40  ;;  %882 = vmatpush3.bf16.msk.msra.mxu0 %vm856_vm4, %v880_v41 }
 0x117   : > { %831 = vmatmul.mubr.msk.f32.vlgmr.msra.gmra.mrb[16].mxu0 %vm421_vm5, %v420_v44  ;;  %796 = vmatmul.mubr.msk.f32.vlgmr.msra.gmra.mrb[0].mxu1 %vm421_vm5, %v420_v44 }
 0x1ea   : > { %v568_v45 = vpop.f32.mrb[16].mxu0  ;;  %v495_v46 = vpop.f32.mrb[0].mxu1 }
 0x1eb   : > { %v832_v47 = vpop.f32.mrb[17].mxu0  ;;  %573 = vrot.lane.b32.xlu0 %v568_v45, %s1004_s6  ;;  %v797_v48 = vpop.f32.mrb[1].mxu1 }
 0x25d   : > { %v574_v9 = vpop.permute.xlu0 %573 }
 0x25e   : > { %v577_v49 = vsel %vm576_vm6, %v495_v46, %v574_v9 }
 0x25f   : > { %579 = vst.msk [vmem:[%s163_s10] sm:$0xf] %vm578_vm7, %v577_v49 }
 0x260   : > { %949 = shalt.err (!%p946_p3)
}
 0x261   : > { %s950_s28 = scalar_lea.hbm %s1114_s20, 64  ;;  %s954_s4 = scalar_lea.hbm %s1159_s3, 128 }
 0x262   : > { %p951_p4 = scmp.ne.s32.totalorder %s1114_s20, %s950_s28  ;;  %p955_p9 = scmp.lt.u32.totalorder %s1114_s20, %s1159_s3 }
 0x263   : > { %p956_p10 = scmp.lt.u32.totalorder %s954_s4, %s950_s28  ;;  %p958_p12 = scmp.lt.u32.totalorder %s950_s28, %s1114_s20 }
 0x264   : > { %p952_p7 = pnand %p951_p4, %p1064_p5 }
 0x265   : > { %p957_p11 = por %p956_p10, %p955_p9 }
 0x266   : > { %p953_p8 = pneg %p952_p7 }
 0x267   : > { %p959_p13 = por %p958_p12, %p957_p11 }
 0x269   : > { %p960_p0 = pnand %p959_p13, %p953_p8 }
 0x26b   : > { %963 = shalt.err (!%p960_p0)
}
 0x26c   : > { %883 = dma.vmem_to_hbm [thread:$0]  (%p1064_p5), %s1116_s11, 64, %s1114_s20, %s581_s24  }
 0x26d PF: > { %p889_p1 = scmp.ge.s32.totalorder %s998_s15, 2  ;;  %s606_s7 = sand.u32 1, %s986_s12  }
 0x26e   : > { %s607_s8 = scalar_lea.sflag [#allocation3], %s606_s7 }
 0x26f   : > { %p886_p2 = pnand %p889_p1, %p1068_p6 }
 0x271   : > { %981 = dma.done.wait (!%p886_p2), %s607_s8, 64  }
 0x272   : > { %983 = vsyncadd (!%p886_p2), %s607_s8, 4294967232  ;;  %p13_p3 = scmp.ge.s32.totalorder %s1051_s18, 4   ;;  %s1162_s12 = smov %s990_s13 }
 0x273   : > { %s1163_s13 = smov %s994_s14  ;;  %s1164_s14 = smov %s1062_s21 }
 0x274   : > { %s1165_s15 = smov %s1051_s18  ;;  %15 = sbr.rel (!%p13_p3) target bundleno = 3 (0x3), region = 67 }
 0x27b   :  { %612 = vsyncpa [#allocation3], 1 }
 0x27c   :  { %614 = vsyncpa [#allocation3 + $0x1], 1 }

</bundles_post_ra>
